<compile_context>
chip_gen: v6e
topology: v6e:2x2x1
jax: 0.10.0
libtpu: 0.0.40
codegen_flags: <defaults>
</compile_context>

<pallas_src>
import functools

import jax
import jax.numpy as jnp
import numpy as np
from jax.experimental import pallas as pl
from jax.experimental.pallas import tpu as pltpu


def _round_up(x, m):
    return ((x + m - 1) // m) * m


# ----------------------------------------------------------------------------
# Fused DoubleConv kernel. One (batch element, L tile) per grid step.
#   x_ref    : (1, Lt, Cin)       bf16 channels-last activation tile
#   halo_ref : (1, 1, 4, Cin)     bf16 rows [tLt-2, tLt-1, tLt+Lt, tLt+Lt+1] of the
#                                 zero-padded input (true-boundary rows are zeros)
#   w1_ref   : (3*Cin, Cout) or (3, Cin, Cout)   bf16, BN1 folded in
#   b1_ref   : (1, Cout)          f32
#   w2_ref   : (3*Cout, Cout) or (3, Cout, Cout) bf16, BN2 folded in
#   b2_ref   : (1, Cout)          f32
#   o_ref    : (1, Lt, Cout)      f32 channels-last output tile
# ----------------------------------------------------------------------------
def _conv3_matmul(window, w_ref, stacked):
    """window: (M+2, C) bf16 rows [l-1 .. l+M]. Returns (M, Cout) f32, pre-bias."""
    m = window.shape[0] - 2
    prev, mid, nxt = window[0:m, :], window[1:m + 1, :], window[2:m + 2, :]
    if stacked:
        # Small C: stack the 3 taps on the lane (contracting) axis -> one matmul.
        lhs = jnp.concatenate([prev, mid, nxt], axis=1)              # (M, 3C)
        return jnp.dot(lhs, w_ref[...], preferred_element_type=jnp.float32)
    # C >= 128: three accumulated matmuls; no (M, 3C) tap materialization and each
    # sub-matmul keeps K >= 128 so MXU utilization is unchanged.
    acc = jnp.dot(prev, w_ref[0], preferred_element_type=jnp.float32)
    acc = acc + jnp.dot(mid, w_ref[1], preferred_element_type=jnp.float32)
    acc = acc + jnp.dot(nxt, w_ref[2], preferred_element_type=jnp.float32)
    return acc


def _double_conv_kernel(x_ref, halo_ref, w1_ref, b1_ref, w2_ref, b2_ref, o_ref,
                        *, lt, l_orig, stacked1, stacked2):
    t = pl.program_id(1)
    x_blk = x_ref[0]                      # (Lt, Cin) bf16
    halo = halo_ref[0, 0]                 # (4, Cin)  bf16
    # x window covering original rows [t*Lt-2, t*Lt+Lt+2); the halo rows beyond the
    # true sequence are zeros (pre-padded in the wrapper) -> conv1 zero padding.
    xw = jnp.concatenate([halo[0:2, :], x_blk, halo[2:4, :]], axis=0)   # (Lt+4, Cin)

    # Conv1 (+ folded BN1) + ReLU over an extended (Lt+2)-row window, f32 epilogue.
    h = _conv3_matmul(xw, w1_ref, stacked1) + b1_ref[...]               # (Lt+2, Cout)
    h = jnp.maximum(h, 0.0)
    # Conv2's zero padding: h at original rows -1 and L must be exactly zero.
    rows = t * lt - 1 + jax.lax.broadcasted_iota(jnp.int32, (h.shape[0], 1), 0)
    h = jnp.where((rows >= 0) & (rows < l_orig), h, 0.0)

    # Conv2 (+ folded BN2) + ReLU; bf16 MXU feed, f32 accumulate.
    y = _conv3_matmul(h.astype(jnp.bfloat16), w2_ref, stacked2) + b2_ref[...]
    o_ref[0] = jnp.maximum(y, 0.0).astype(o_ref.dtype)                  # (Lt, Cout)


# ----------------------------------------------------------------------------
# One-time parameter prep (NOT in the hot path): fold BatchNorm (eval semantics,
# eps=1e-5) into the convs, lay weights out for the in-kernel matmuls, cast to bf16.
# ----------------------------------------------------------------------------
def prepare_double_conv_params(params, eps=1e-5):
    def fold(w, b, gamma, beta, mean, var):
        cout, cin, _ = w.shape
        scale = gamma * jax.lax.rsqrt(var + eps)                    # (Cout,)
        w3 = jnp.transpose(w * scale[:, None, None], (2, 1, 0))     # (3, Cin, Cout); taps [l-1,l,l+1]
        bias = ((b - mean) * scale + beta).reshape(1, cout)
        stacked = cin < 128            # tiny contracting dim -> stack taps on lanes
        if stacked:
            w3 = w3.reshape(3 * cin, cout)
        return w3.astype(jnp.bfloat16), bias.astype(jnp.float32), stacked

    w1, b1, s1 = fold(params["w1"], params["b1"], params["bn1_gamma"],
                      params["bn1_beta"], params["bn1_mean"], params["bn1_var"])
    w2, b2, s2 = fold(params["w2"], params["b2"], params["bn2_gamma"],
                      params["bn2_beta"], params["bn2_mean"], params["bn2_var"])
    return {"w1": w1, "b1": b1, "stacked1": s1, "w2": w2, "b2": b2, "stacked2": s2}


# ----------------------------------------------------------------------------
# Wrapper: one fused pallas_call over (batch, L-tiles).
# ----------------------------------------------------------------------------
def double_conv_forward(x, prep, *, l_tile=512):
    """x: (N, Cin, L) f32 -> (N, Cout, L) f32 (PyTorch DoubleConv.forward, eval-mode BN)."""
    n, cin, l = x.shape
    cout = prep["b1"].shape[-1]

    # L tile: multiple of 16 (bf16 sublane packing), bounded so double-buffered blocks
    # fit comfortably under the scoped-VMEM limit below (re-derive for very wide Cout).
    lt = _round_up(max(16, min(l_tile, _round_up(l, 16))), 16)
    l_pad = _round_up(l, lt)
    n_t = l_pad // lt

    # Layout plumbing done ONCE outside the kernel: NCL -> NLC, bf16 MXU feed dtype,
    # zero-pad L up to a tile multiple.  (Ideally adjacent layers produce/consume NLC
    # directly and this transpose disappears entirely.)
    x_nlc = jnp.transpose(x, (0, 2, 1)).astype(jnp.bfloat16)         # (N, L, Cin)
    x_core = jnp.pad(x_nlc, ((0, 0), (0, l_pad - l), (0, 0)))        # (N, l_pad, Cin)

    # Per-tile halo rows (2 before + 2 after each tile); zeros at the true sequence
    # boundaries. Tiny (N, n_t, 4, Cin) side array -> no overlapping BlockSpec windows
    # and no in-kernel rolls/iota masks for the input.
    x_hsrc = jnp.pad(x_core, ((0, 0), (2, 2), (0, 0)))               # (N, l_pad+4, Cin)
    lo = x_hsrc[:, :l_pad, :].reshape(n, n_t, lt, cin)[:, :, :2, :]
    hi = x_hsrc[:, 4:, :].reshape(n, n_t, lt, cin)[:, :, lt - 2:, :]
    halos = jnp.concatenate([lo, hi], axis=2)                         # (N, n_t, 4, Cin)

    w1, b1, w2, b2 = prep["w1"], prep["b1"], prep["w2"], prep["b2"]
    kernel = functools.partial(_double_conv_kernel, lt=lt, l_orig=l,
                               stacked1=prep["stacked1"], stacked2=prep["stacked2"])

    out = pl.pallas_call(
        kernel,
        out_shape=jax.ShapeDtypeStruct((n, l_pad, cout), jnp.float32),
        grid=(n, n_t),
        in_specs=[
            pl.BlockSpec((1, lt, cin), lambda i, t: (i, t, 0)),        # activation tile
            pl.BlockSpec((1, 1, 4, cin), lambda i, t: (i, t, 0, 0)),   # its halo rows
            # Weights/biases: full-extent blocks with constant index_map -> DMA'd once,
            # VMEM-resident across the grid.  (On v7x's 64 MiB VMEM one can additionally
            # set pipeline_mode=pl.Buffered(1) here to drop the redundant second buffer.)
            pl.BlockSpec(w1.shape, lambda i, t: (0,) * w1.ndim),
            pl.BlockSpec(b1.shape, lambda i, t: (0, 0)),
            pl.BlockSpec(w2.shape, lambda i, t: (0,) * w2.ndim),
            pl.BlockSpec(b2.shape, lambda i, t: (0, 0)),
        ],
        out_specs=pl.BlockSpec((1, lt, cout), lambda i, t: (i, t, 0)),
        compiler_params=pltpu.CompilerParams(
            # Both grid axes are independent -> megacore/TC sharding + deep pipeline.
            dimension_semantics=("parallel", "parallel"),
            # Explicit scoped-VMEM budget: above v5e's 16 MiB default, within v7x's 64 MiB.
            vmem_limit_bytes=32 * 1024 * 1024,
        ),
    )(x_core, halos, w1, b1, w2, b2)

    # Drop the L padding and go back to the PyTorch (N, Cout, L) layout once.
    return jnp.transpose(out[:, :l, :], (0, 2, 1))


# ----------------------------------------------------------------------------
# Pure-JAX f32 reference (Conv1d + BatchNorm1d(eval) + ReLU, twice).
# ----------------------------------------------------------------------------
def reference_forward(x, params, eps=1e-5):
    def conv1d(t, w, b):
        y = jax.lax.conv_general_dilated(
            t, w, window_strides=(1,), padding=((1, 1),),
            dimension_numbers=("NCH", "OIH", "NCH"),
            precision=jax.lax.Precision.HIGHEST)
        return y + b[None, :, None]

    def bn(t, g, be, mu, var):
        return ((t - mu[None, :, None]) * jax.lax.rsqrt(var[None, :, None] + eps)
                * g[None, :, None] + be[None, :, None])

    h = jnp.maximum(bn(conv1d(x, params["w1"], params["b1"]),
                       params["bn1_gamma"], params["bn1_beta"],
                       params["bn1_mean"], params["bn1_var"]), 0.0)
    return jnp.maximum(bn(conv1d(h, params["w2"], params["b2"]),
                          params["bn2_gamma"], params["bn2_beta"],
                          params["bn2_mean"], params["bn2_var"]), 0.0)


def _make_params(key, cin, cout):
    ks = jax.random.split(key, 12)
    s1 = 1.0 / np.sqrt(3 * cin)
    s2 = 1.0 / np.sqrt(3 * cout)
    return {
        "w1": s1 * jax.random.normal(ks[0], (cout, cin, 3), jnp.float32),
        "b1": 0.1 * jax.random.normal(ks[1], (cout,), jnp.float32),
        "bn1_gamma": 1.0 + 0.1 * jax.random.normal(ks[2], (cout,), jnp.float32),
        "bn1_beta": 0.1 * jax.random.normal(ks[3], (cout,), jnp.float32),
        "bn1_mean": 0.1 * jax.random.normal(ks[4], (cout,), jnp.float32),
        "bn1_var": 0.5 + jnp.abs(jax.random.normal(ks[5], (cout,), jnp.float32)),
        "w2": s2 * jax.random.normal(ks[6], (cout, cout, 3), jnp.float32),
        "b2": 0.1 * jax.random.normal(ks[7], (cout,), jnp.float32),
        "bn2_gamma": 1.0 + 0.1 * jax.random.normal(ks[8], (cout,), jnp.float32),
        "bn2_beta": 0.1 * jax.random.normal(ks[9], (cout,), jnp.float32),
        "bn2_mean": 0.1 * jax.random.normal(ks[10], (cout,), jnp.float32),
        "bn2_var": 0.5 + jnp.abs(jax.random.normal(ks[11], (cout,), jnp.float32)),
    }


if __name__ == "__main__":
    root = jax.random.PRNGKey(0)
    k_p1, k_p2, k_x1, k_x2 = jax.random.split(root, 4)

    # Case 1: tiny channels (stacked-tap path); L=20 with Lt=16 exercises L tiling,
    # halo handling, zero-padding and true-boundary masking.
    p1 = _make_params(k_p1, 4, 8)
    x1 = jax.random.normal(k_x1, (2, 4, 20), jnp.float32)
    out1 = jax.block_until_ready(
        double_conv_forward(x1, prepare_double_conv_params(p1), l_tile=16))
    ref1 = jax.block_until_ready(reference_forward(x1, p1))
    # bf16 MXU feed -> slightly looser tolerance than the f32 reference.
    np.testing.assert_allclose(np.asarray(out1), np.asarray(ref1), rtol=5e-2, atol=5e-2)

    # Case 2: 128 channels (3-accumulated-matmul path, lane-dense I/O), 2 L tiles.
    p2 = _make_params(k_p2, 128, 128)
    x2 = jax.random.normal(k_x2, (2, 128, 256), jnp.float32)
    out2 = jax.block_until_ready(
        double_conv_forward(x2, prepare_double_conv_params(p2), l_tile=128))
    ref2 = jax.block_until_ready(reference_forward(x2, p2))
    np.testing.assert_allclose(np.asarray(out2), np.asarray(ref2), rtol=5e-2, atol=5e-2)

    # TODO(synk): training-mode BatchNorm (batch statistics + running-stat updates) is
    # not modeled; this implements eval/inference semantics with BN folded into the convs.
    # TODO(synk): for very short L with large batch, pack several batch elements per grid
    # step (flatten into the matmul M dim) to amortize the ~0.35us/step grid overhead.
    print("KERNEL_OK")
</pallas_src>

<mosaic_0001>
module attributes {stable_mosaic.version = 11 : i64} {
  func.func @_double_conv_kernel(%arg0: i32, %arg1: i32, %arg2: memref<1x16x4xbf16, #tpu.memory_space<vmem>>, %arg3: memref<1x1x4x4xbf16, #tpu.memory_space<vmem>>, %arg4: memref<12x8xbf16, #tpu.memory_space<vmem>>, %arg5: memref<1x8xf32, #tpu.memory_space<vmem>>, %arg6: memref<24x8xbf16, #tpu.memory_space<vmem>>, %arg7: memref<1x8xf32, #tpu.memory_space<vmem>>, %arg8: memref<1x16x8xf32, #tpu.memory_space<vmem>>) attributes {dimension_semantics = [#tpu.dimension_semantics<parallel>, #tpu.dimension_semantics<parallel>], iteration_bounds = array<i64: 2, 2>, scalar_prefetch = 0 : i64, scratch_operands = 0 : i64, tpu.core_type = #tpu.core_type<tc>, window_params = [{transform_indices = @transform_0, window_bounds = array<i64: 1, 16, 4>}, {transform_indices = @transform_1, window_bounds = array<i64: 1, 1, 4, 4>}, {pipeline_mode = #tpu.pipeline_mode<synchronous>, transform_indices = @transform_2, window_bounds = array<i64: 12, 8>}, {pipeline_mode = #tpu.pipeline_mode<synchronous>, transform_indices = @transform_3, window_bounds = array<i64: 1, 8>}, {pipeline_mode = #tpu.pipeline_mode<synchronous>, transform_indices = @transform_4, window_bounds = array<i64: 24, 8>}, {pipeline_mode = #tpu.pipeline_mode<synchronous>, transform_indices = @transform_5, window_bounds = array<i64: 1, 8>}, {transform_indices = @transform_6, window_bounds = array<i64: 1, 16, 8>}]} {
    %c0 = arith.constant 0 : index
    %c0_0 = arith.constant 0 : index
    %c0_1 = arith.constant 0 : index
    %0 = vector.load %arg2[%c0, %c0_0, %c0_1] : memref<1x16x4xbf16, #tpu.memory_space<vmem>>, vector<1x16x4xbf16>
    %1 = vector.shape_cast %0 : vector<1x16x4xbf16> to vector<16x4xbf16>
    %c0_2 = arith.constant 0 : index
    %c0_3 = arith.constant 0 : index
    %c0_4 = arith.constant 0 : index
    %c0_5 = arith.constant 0 : index
    %2 = vector.load %arg3[%c0_2, %c0_3, %c0_4, %c0_5] : memref<1x1x4x4xbf16, #tpu.memory_space<vmem>>, vector<1x1x4x4xbf16>
    %3 = vector.shape_cast %2 : vector<1x1x4x4xbf16> to vector<4x4xbf16>
    %4 = vector.extract_strided_slice %3 {offsets = [0, 0], sizes = [2, 4], strides = [1, 1]} : vector<4x4xbf16> to vector<2x4xbf16>
    %5 = vector.extract_strided_slice %3 {offsets = [2, 0], sizes = [2, 4], strides = [1, 1]} : vector<4x4xbf16> to vector<2x4xbf16>
    %6 = tpu.concatenate %4, %1, %5 in 0 : vector<2x4xbf16>, vector<16x4xbf16>, vector<2x4xbf16> -> vector<20x4xbf16>
    %7 = vector.extract_strided_slice %6 {offsets = [0, 0], sizes = [18, 4], strides = [1, 1]} : vector<20x4xbf16> to vector<18x4xbf16>
    %8 = vector.extract_strided_slice %6 {offsets = [1, 0], sizes = [18, 4], strides = [1, 1]} : vector<20x4xbf16> to vector<18x4xbf16>
    %9 = vector.extract_strided_slice %6 {offsets = [2, 0], sizes = [18, 4], strides = [1, 1]} : vector<20x4xbf16> to vector<18x4xbf16>
    %10 = tpu.concatenate %7, %8, %9 in 1 : vector<18x4xbf16>, vector<18x4xbf16>, vector<18x4xbf16> -> vector<18x12xbf16>
    %c0_6 = arith.constant 0 : index
    %c0_7 = arith.constant 0 : index
    %11 = vector.load %arg4[%c0_6, %c0_7] : memref<12x8xbf16, #tpu.memory_space<vmem>>, vector<12x8xbf16>
    %cst = arith.constant dense<0.000000e+00> : vector<18x8xf32>
    %12 = tpu.matmul %10, %11, %cst {dimension_numbers = #tpu.dot_dimension_numbers<[1], [0], [0], [1], [0, 0, 1, 1], [], []>} : vector<18x12xbf16>, vector<12x8xbf16>, vector<18x8xf32> -> vector<18x8xf32>
    %c0_8 = arith.constant 0 : index
    %c0_9 = arith.constant 0 : index
    %13 = vector.load %arg5[%c0_8, %c0_9] : memref<1x8xf32, #tpu.memory_space<vmem>>, vector<1x8xf32>
    %14 = vector.broadcast %13 : vector<1x8xf32> to vector<18x8xf32>
    %15 = arith.addf %12, %14 : vector<18x8xf32>
    %cst_10 = arith.constant 0.000000e+00 : f32
    %16 = vector.broadcast %cst_10 : f32 to vector<18x8xf32>
    %17 = arith.maximumf %15, %16 : vector<18x8xf32>
    %c16_i32 = arith.constant 16 : i32
    %18 = arith.muli %arg1, %c16_i32 : i32
    %c1_i32 = arith.constant 1 : i32
    %19 = arith.subi %18, %c1_i32 : i32
    %20 = tpu.iota {dimensions = array<i32: 0>} : vector<18x1xi32>
    %21 = vector.broadcast %19 : i32 to vector<18x1xi32>
    %22 = arith.addi %21, %20 : vector<18x1xi32>
    %c0_i32 = arith.constant 0 : i32
    %23 = vector.broadcast %c0_i32 : i32 to vector<18x1xi32>
    %24 = arith.cmpi sge, %22, %23 : vector<18x1xi32>
    %c20_i32 = arith.constant 20 : i32
    %25 = vector.broadcast %c20_i32 : i32 to vector<18x1xi32>
    %26 = arith.cmpi slt, %22, %25 : vector<18x1xi32>
    %27 = arith.andi %24, %26 : vector<18x1xi1>
    %cst_11 = arith.constant 0.000000e+00 : f32
    %28 = vector.shape_cast %27 : vector<18x1xi1> to vector<18x1xi1>
    %29 = vector.broadcast %28 : vector<18x1xi1> to vector<18x8xi1>
    %30 = vector.broadcast %cst_11 : f32 to vector<18x8xf32>
    %31 = arith.select %29, %17, %30 : vector<18x8xi1>, vector<18x8xf32>
    %32 = arith.truncf %31 : vector<18x8xf32> to vector<18x8xbf16>
    %33 = vector.extract_strided_slice %32 {offsets = [0, 0], sizes = [16, 8], strides = [1, 1]} : vector<18x8xbf16> to vector<16x8xbf16>
    %34 = vector.extract_strided_slice %32 {offsets = [1, 0], sizes = [16, 8], strides = [1, 1]} : vector<18x8xbf16> to vector<16x8xbf16>
    %35 = vector.extract_strided_slice %32 {offsets = [2, 0], sizes = [16, 8], strides = [1, 1]} : vector<18x8xbf16> to vector<16x8xbf16>
    %36 = tpu.concatenate %33, %34, %35 in 1 : vector<16x8xbf16>, vector<16x8xbf16>, vector<16x8xbf16> -> vector<16x24xbf16>
    %c0_12 = arith.constant 0 : index
    %c0_13 = arith.constant 0 : index
    %37 = vector.load %arg6[%c0_12, %c0_13] : memref<24x8xbf16, #tpu.memory_space<vmem>>, vector<24x8xbf16>
    %cst_14 = arith.constant dense<0.000000e+00> : vector<16x8xf32>
    %38 = tpu.matmul %36, %37, %cst_14 {dimension_numbers = #tpu.dot_dimension_numbers<[1], [0], [0], [1], [0, 0, 1, 1], [], []>} : vector<16x24xbf16>, vector<24x8xbf16>, vector<16x8xf32> -> vector<16x8xf32>
    %c0_15 = arith.constant 0 : index
    %c0_16 = arith.constant 0 : index
    %39 = vector.load %arg7[%c0_15, %c0_16] : memref<1x8xf32, #tpu.memory_space<vmem>>, vector<1x8xf32>
    %40 = vector.broadcast %39 : vector<1x8xf32> to vector<16x8xf32>
    %41 = arith.addf %38, %40 : vector<16x8xf32>
    %cst_17 = arith.constant 0.000000e+00 : f32
    %42 = vector.broadcast %cst_17 : f32 to vector<16x8xf32>
    %43 = arith.maximumf %41, %42 : vector<16x8xf32>
    %c0_18 = arith.constant 0 : index
    %c0_19 = arith.constant 0 : index
    %c0_20 = arith.constant 0 : index
    %44 = vector.load %arg8[%c0_18, %c0_19, %c0_20] : memref<1x16x8xf32, #tpu.memory_space<vmem>>, vector<1x16x8xf32>
    %45 = vector.shape_cast %44 : vector<1x16x8xf32> to vector<16x8xf32>
    %46 = vector.shape_cast %43 : vector<16x8xf32> to vector<1x16x8xf32>
    tpu.vector_store %arg8[%c0_18, %c0_19, %c0_20], %46 {strides = array<i32>} : memref<1x16x8xf32, #tpu.memory_space<vmem>>, vector<1x16x8xf32>,
    return
  }
  func.func @transform_0(%arg0: i32, %arg1: i32) -> (i32, i32, i32) {
    %c0_i32 = arith.constant 0 : i32
    %c0_i32_0 = arith.constant 0 : i32
    return %arg0, %arg1, %c0_i32 : i32, i32, i32
  }
  func.func @transform_1(%arg0: i32, %arg1: i32) -> (i32, i32, i32, i32) {
    %c0_i32 = arith.constant 0 : i32
    %c0_i32_0 = arith.constant 0 : i32
    %c0_i32_1 = arith.constant 0 : i32
    return %arg0, %arg1, %c0_i32, %c0_i32_0 : i32, i32, i32, i32
  }
  func.func @transform_2(%arg0: i32, %arg1: i32) -> (i32, i32) {
    %c0_i32 = arith.constant 0 : i32
    %c0_i32_0 = arith.constant 0 : i32
    %c0_i32_1 = arith.constant 0 : i32
    return %c0_i32, %c0_i32_0 : i32, i32
  }
  func.func @transform_3(%arg0: i32, %arg1: i32) -> (i32, i32) {
    %c0_i32 = arith.constant 0 : i32
    %c0_i32_0 = arith.constant 0 : i32
    %c0_i32_1 = arith.constant 0 : i32
    return %c0_i32, %c0_i32_0 : i32, i32
  }
  func.func @transform_4(%arg0: i32, %arg1: i32) -> (i32, i32) {
    %c0_i32 = arith.constant 0 : i32
    %c0_i32_0 = arith.constant 0 : i32
    %c0_i32_1 = arith.constant 0 : i32
    return %c0_i32, %c0_i32_0 : i32, i32
  }
  func.func @transform_5(%arg0: i32, %arg1: i32) -> (i32, i32) {
    %c0_i32 = arith.constant 0 : i32
    %c0_i32_0 = arith.constant 0 : i32
    %c0_i32_1 = arith.constant 0 : i32
    return %c0_i32, %c0_i32_0 : i32, i32
  }
  func.func @transform_6(%arg0: i32, %arg1: i32) -> (i32, i32, i32) {
    %c0_i32 = arith.constant 0 : i32
    %c0_i32_0 = arith.constant 0 : i32
    return %arg0, %arg1, %c0_i32 : i32, i32, i32
  }
}

</mosaic_0001>

<bundles_post_ra>
// kernel: tpu_custom_call.1
= control target key start
LH: loop header
LB: loop body
LE: loop exit
PB: predicated region body
PF: predicated region fallthrough
CT: control target
= control target key end

     0   :  { %s860_s21 = smov 0   ;;  %s862_s22 = smov 0   ;;  %s951_s0 = inlined_call_operand.vmem [shape: bf16[2,32,4], index: 0, kind: input, shape index: {}]   ;;  %s952_s1 = inlined_call_operand.vmem [shape: bf16[2,2,4,4], index: 1, kind: input, shape index: {}]   ;;  %s953_s2 = inlined_call_operand.vmem [shape: bf16[12,8], index: 2, kind: input, shape index: {}]   ;;  %s954_s3 = inlined_call_operand.vmem [shape: f32[1,8], index: 3, kind: input, shape index: {}]   ;;  %s955_s4 = inlined_call_operand.vmem [shape: bf16[24,8], index: 4, kind: input, shape index: {}]   ;;  %s956_s5 = inlined_call_operand.vmem [shape: f32[1,8], index: 5, kind: input, shape index: {}]   ;;  %s957_s6 = inlined_call_operand.vmem [shape: f32[2,32,8], index: 6, kind: output, shape index: {}]  }
   0x1   :  { %s864_s23 = smov 0   ;;  %s866_s24 = smov 0  }
   0x2   :  { %s868_s25 = smov 0  }
   0x3 LB: > { %s25_s26 = sadd.s32 1, %s810_s23  ;;  %s28_s27 = sadd.s32 1, %s814_s24  ;;  %s818_s25 = sphi %s868_s25, %s16_s25   ;;  %s814_s24 = sphi %s866_s24, %s961_s24   ;;  %s810_s23 = sphi %s864_s23, %s960_s23   ;;  %s806_s22 = sphi %s862_s22, %s959_s22   ;;  %s802_s21 = sphi %s860_s21, %s958_s21  }
   0x4   : > { %p26_p0 = scmp.ge.s32.totalorder %s25_s26, 2  ;;  %p688_p1 = scmp.ge.s32.totalorder %s818_s25, 1 }
   0x5   : > { %p248_p2 = scmp.lt.s32.totalorder %s818_s25, 5 }
   0x6   : > { %s963_s26 = smov (%p26_p0, %s25_s26), 0  ;;  %s965_s27 = smov (!%p26_p0, %s28_s27), %s814_s24 }
   0x7   : > { %p249_p3 = pnand %p688_p1, %p248_p2  ;;  %p30_p4 = scmp.ge.s32.totalorder %s965_s27, 2 }
   0x8   : > { %s689_s28 = sshll.u32 (!%p249_p3), %s802_s21, 1  ;;  %p295_p5 = scmp.lt.s32.totalorder (!%p249_p3), %s806_s22, 1 }
   0x9   : > { %s967_s27 = smov (%p30_p4, %s965_s27), 0  ;;  %252 = sbr.rel (%p249_p3) target bundleno = 686 (0x2ae), region = 44 }
   0xa   : > { %p297_p6 = scmp.lt.s32.totalorder (!%p249_p3), %s689_s28, 3  ;;  %p306_p7 = scmp.lt.s32.totalorder (!%p249_p3), %s802_s21, 1 }
   0xb   : > { %s820_s20 = smov (!%p249_p3), 8  }
   0xe   : > { %s969_s22 = smov (!%p295_p5, %s806_s22), 1  ;;  %s971_s28 = smov (!%p297_p6, %s689_s28), 3  ;;  %v777_v1 = vld [vmem:[%s953_s2] sm:$0x3f]   ;;  %vm394_vm0 = vcmask 1045504   ;;  %vm332_vm1 = vcmask 1040384   ;;  %v451_v30 = vlaneseq }
   0xf   : > { %s690_s29 = sshll.u32 %s969_s22, 2  ;;  %s692_s11 = sshll.u32 %s969_s22, 1  ;;  %730 = vmatprep.subr.msk.bf16.mxu0 %vm394_vm0, %v777_v1  ;;  %v396_v3 = vsel %vm394_vm0, %v777_v1, 0  ;;  %vm357_vm2 = vcmask 1046528   ;;  %vm337_vm3 = vsmask.f32 7424 }
  0x10   : > { %s894_s30 = sadd.s32 %s690_s29, %s971_s28  ;;  %717 = vmatpush3.bf16.msra.mxu0 %v396_v3  ;;  %s821_s22 = smov 4   ;;  %vm365_vm4 = vcmask 31744   ;;  %vm370_vm5 = vcmask 64512   ;;  %vm389_vm6 = vcmask 97280   ;;  %v778_v27 = vld [vmem:[%s955_s4 + $0x8] ss:$0 sps:$4 sm:$0xff]  }
  0x11   : > { %s691_s7 = sshll.u32 %s894_s30, 2  ;;  %vm527_vm7 = vcmask 1043456   ;;  %v822_v28 = vmov 0.0   ;;  %v452_v31 = vshrl.u32 %v451_v30, 7  ;;  %v698_v36 = vld [vmem:[%s954_s3] ss:$0 sm:$0xff] }
  0x12   : > { %s302_s10 = scalar_lea.vmem %s951_s0, %s691_s7  ;;  %722 = vmatprep.subr.bf16.mxu1 %v822_v28  ;;  %v529_v29 = vsel %vm527_vm7, %v778_v27, 0  ;;  %s702_s7 = sshll.u32 %s802_s21, 4  ;;  %v779_v44 = vld [vmem:[%s955_s4] sm:$0xff]  }
  0x13   : > { %s307_s12 = scalar_select %p306_p7, %s802_s21, 1  ;;  %v776_v0 = vld [vmem:[%s302_s10] sm:$0xff]   ;;  %723 = vmatpush3.bf16.msra.mxu1 %v529_v29  ;;  %v454_v32 = vadd.s32 16, %v452_v31  ;;  %v453_v35 = vadd.s32 8, %v452_v31 }
  0x14   : > { %v331_v2 = vrot.slane %v776_v0, 7  ;;  %724 = vmatprep.subr.bf16.mxu1 %v822_v28  ;;  %s703_s8 = sadd.s32 4294967295, %s702_s7 }
  0x15   : > { %s309_s15 = sadd.s32 %s692_s11, %s307_s12  ;;  %v455_v33 = vstv %s703_s8  ;;  %s824_s12 = smov 16  }
  0x16   : > { %s693_s16 = sshll.u32 %s309_s15, 1  ;;  %v458_v34 = vadd.s32 %v455_v33, %v454_v32  ;;  %v456_v38 = vadd.s32 %v455_v33, %v452_v31  ;;  %v457_v40 = vadd.s32 %v455_v33, %v453_v35  ;;  %s696_s15 = sshll.u32 %s894_s30, 3 }
  0x17   : > { %s311_s19 = scalar_lea.vmem %s952_s1, %s693_s16  ;;  %725 = vmatpush3.bf16.msra.mxu1 %v779_v44  ;;  %s320_s18 = scalar_lea.vmem %s957_s6, %s696_s15 }
  0x18   : > { %v325_v4 = vld [vmem:[%s311_s19] sm:$0x3]  ;;  %vm461_vm8 = vcmp.ge.s32.totalorder %v458_v34, 0  ;;  %vm464_vm9 = vcmp.lt.s32.totalorder %v458_v34, 20  ;;  %vm459_vm11 = vcmp.ge.s32.totalorder %v456_v38, 0  ;;  %vm462_vm12 = vcmp.lt.s32.totalorder %v456_v38, 20 }
  0x19   : > { %v335_v5 = vsel %vm332_vm1, %v325_v4, %v331_v2  ;;  %v336_v6 = vsel %vm332_vm1, %v331_v2, %v325_v4  ;;  %vm467_vm10 = vmand %vm461_vm8, %vm464_vm9  ;;  %vm460_vm13 = vcmp.ge.s32.totalorder %v457_v40, 0  ;;  %vm463_vm14 = vcmp.lt.s32.totalorder %v457_v40, 20 }
  0x1a   : > { %v338_v7 = vshrl.u32 %v335_v5, 16  ;;  %v340_v8 = vshll.u32 %v335_v5, 16  ;;  %v344_v9 = vshll.u32 %v336_v6, 16  ;;  %v358_v10 = vrot.slane %v335_v5, 1  ;;  %vm465_vm15 = vmand %vm459_vm11, %vm462_vm12 }
  0x1b   : > { %v359_v11 = vrot.slane %v336_v6, 1  ;;  %v348_v15 = vshrl.u32 %v336_v6, 16  ;;  %vm466_vm0 = vmand %vm460_vm13, %vm463_vm14  ;;  %vm823_vm1 = vmmov 0  }
  0x1c   : > { %v342_v12 = vrot.slane %v340_v8, 1  ;;  %v346_v13 = vrot.slane %v344_v9, 1  ;;  %726 = vmatprep.mubr.msk.bf16.mxu1 %vm823_vm1, %v822_v28 }
  0x1d   : > { %v360_v14 = vsel %vm357_vm2, %v358_v10, %v359_v11 }
  0x1e   : > { %v343_v16 = vor.u32 %v342_v12, %v338_v7  ;;  %361 = vrot.lane.b32.xlu1 %v360_v14, %s820_s20  ;;  %v350_v18 = vor.u32 %v348_v15, %v346_v13 }
  0x20   : > { %v347_v17 = vsel %vm337_vm3, %v343_v16, %v346_v13 }
  0x21   : > { %351 = vrot.lane.b32.xlu0 %v347_v17, %s821_s22 }
  0x22   : > { %363 = vrot.lane.b32.xlu1 %v359_v11, %s820_s20 }
  0x25   : > { %353 = vrot.lane.b32.xlu0 %v350_v18, %s821_s22 }
  0x90   : > { %v362_v19 = vpop.permute.xlu1 %361 }
  0x93   : > { %v352_v20 = vpop.permute.xlu0 %351 }
  0x94   : > { %v367_v21 = vsel %vm365_vm4, %v335_v5, %v352_v20  ;;  %v364_v23 = vpop.permute.xlu1 %363  ;;  %v704_v5 = vld [vmem:[%s956_s5] ss:$0 sm:$0xff] }
  0x95   : > { %v372_v22 = vsel %vm370_vm5, %v367_v21, %v362_v19 }
  0x96   : > { %718 = vmatprep.mubr.msk.bf16.mxu0 %vm389_vm6, %v372_v22 }
  0x97   : > { %v354_v24 = vpop.permute.xlu0 %353 }
  0x98   : > { %v369_v25 = vsel %vm365_vm4, %v336_v6, %v354_v24  ;;  %vm502_vm4 = vcmask 130048  }
  0x99   : > { %v374_v26 = vsel %vm370_vm5, %v369_v25, %v364_v23 }
  0x9a   : > { %719 = vmatmul.mubr.msk.bf16.vlgmr.msra.gmra.mxu0 %vm389_vm6, %v374_v26  ;;  %vm524_vm6 = vcmask 195584  }
 0x15a   : > { %v720_v37 = vpop.f32.mrf.mxu0 }
 0x15b   : > { %v441_v39 = vadd.f32 %v720_v37, %v698_v36 }
 0x15c   : > { %v432_v41 = vpop.f32.mrf.mxu0 }
 0x15d   : > { %v448_v42 = vmax.f32 %v441_v39, 0.0  ;;  %v433_v43 = vadd.f32 %v698_v36, %v432_v41 }
 0x15e   : > { %v721_v45 = vpop.f32.mrf.mxu0 }
 0x15f   : > { %v476_v47 = vsel %vm467_vm10, %v448_v42, 0.0  ;;  %v446_v48 = vmax.f32 %v433_v43, 0.0 }
 0x160   : > { %v435_v46 = vpop.f32.mrf.mxu0  ;;  %v478_v51 = vpack.c.bf16 %v476_v47, %v476_v47 }
 0x161   : > { %v436_v49 = vadd.f32 %v698_v36, %v435_v46  ;;  %v474_v52 = vsel %vm465_vm15, %v446_v48, 0.0 }
 0x162   : > { %v487_v55 = vshll.u32 %v478_v51, 16  ;;  %v496_v56 = vrot.slane %v478_v51, 1 }
 0x163   : > { %v447_v50 = vmax.f32 %v436_v49, 0.0 }
 0x164   : > { %v489_v62 = vrot.slane %v487_v55, 1 }
 0x165   : > { %v475_v53 = vsel %vm466_vm0, %v447_v50, 0.0 }
 0x166   : > { %v477_v54 = vpack.c.bf16 %v475_v53, %v474_v52 }
 0x168   : > { %v495_v57 = vrot.slane %v477_v54, 1  ;;  %v482_v58 = vshll.u32 %v477_v54, 16  ;;  %v480_v60 = vshrl.u32 %v477_v54, 16 }
 0x16a   : > { %v497_v59 = vsel %vm357_vm2, %v495_v57, %v496_v56  ;;  %v484_v61 = vrot.slane %v482_v58, 1 }
 0x16b   : > { %498 = vrot.lane.b32.xlu1 %v497_v59, %s824_s12 }
 0x16c   : > { %v485_v63 = vor.u32 %v484_v61, %v480_v60 }
 0x16e   : > { %v490_v0 = vsel %vm337_vm3, %v485_v63, %v489_v62 }
 0x16f   : > { %491 = vrot.lane.b32.xlu0 %v490_v0, %s820_s20 }
 0x1dd   : > { %v499_v2 = vpop.permute.xlu1 %498 }
 0x1e1   : > { %v492_v1 = vpop.permute.xlu0 %491 }
 0x1e2   : > { %v501_v3 = vsel %vm370_vm5, %v477_v54, %v492_v1 }
 0x1e3   : > { %v504_v4 = vsel %vm502_vm4, %v501_v3, %v499_v2 }
 0x1e4   : > { %727 = vmatmul.mubr.msk.bf16.vlgmr.msra.gmra.mxu1 %vm524_vm6, %v504_v4 }
 0x2a4   : > { %v565_v6 = vpop.f32.mrf.mxu1 }
 0x2a5   : > { %v566_v7 = vadd.f32 %v704_v5, %v565_v6 }
 0x2a6   : > { %v728_v8 = vpop.f32.mrf.mxu1 }
 0x2a7   : > { %v572_v9 = vmax.f32 %v566_v7, 0.0 }
 0x2a8   : > { %v568_v10 = vpop.f32.mrf.mxu1 }
 0x2a9   : > { %574 = vst.msk [vmem:[%s320_s18] sm:$0xff] %vm370_vm5, %v572_v9  ;;  %v569_v11 = vadd.f32 %v704_v5, %v568_v10 }
 0x2aa   : > { %v729_v12 = vpop.f32.mrf.mxu1 }
 0x2ab   : > { %v573_v13 = vmax.f32 %v569_v11, 0.0 }
 0x2ad   : > { %575 = vst.msk [vmem:[%s320_s18 + $0x8] sm:$0xff] %vm370_vm5, %v573_v13 }
 0x2ae PF: > { %s16_s25 = sadd.s32 1, %s818_s25   ;;  %s958_s21 = smov %s810_s23 }
 0x2af   : > { %p13_p8 = scmp.ge.s32.totalorder %s16_s25, 6   ;;  %s959_s22 = smov %s814_s24 }
 0x2b0   : > { %s960_s23 = smov %s963_s26  ;;  %s961_s24 = smov %s967_s27 }
 0x2b1   :  { %15 = sbr.rel (!%p13_p8) target bundleno = 3 (0x3), region = 77 }

</bundles_post_ra>
